<compile_context>
chip_gen: v7x
topology: tpu7x:2x2x1
jax: 0.10.0
libtpu: 0.0.40
codegen_flags: <defaults>
</compile_context>

<pallas_src>
import jax
import jax.numpy as jnp
from jax.experimental import pallas as pl
from jax.experimental.pallas import tpu as pltpu

_LANES = 128
_SUBLANES = 8


def _round_up(x, m):
    return ((x + m - 1) // m) * m


def _mcl_kernel(x_ref, w_ref, label_ref, mask_ref, y_ref, part_ref):
    """One row tile: fused matmul + in-register masked squared-error partials."""
    x = x_ref[...]                                       # [TB, D] (compute dtype)

    # Single fused MXU push.  Lanes [0:C) = x @ (w_label - w_teacher) (loss
    # branch, stays in registers), lanes [cd:cd+2C) = [pred_label | unimodal].
    y = jnp.dot(x, w_ref[...], preferred_element_type=jnp.float32)  # [TB, cd+co]
    co = y_ref.shape[-1]
    cd = y.shape[-1] - co

    # Predictions live at a 128-aligned offset -> one lane-dense unmasked store.
    y_ref[...] = y[:, cd:].astype(y_ref.dtype)

    # Loss epilogue (fp32 on the VPU, no cross-lane movement): label is streamed
    # at natural width C and subtracted from the diff lanes [0:C).
    c = label_ref.shape[-1]
    z = y[:, :c] - label_ref[...]                        # [TB, C]
    sq = z * z * mask_ref[...]                           # row {0,1} mask broadcasts
    p = jnp.sum(sq, axis=0, keepdims=True)               # [1, C] sublane reduce only

    if c == part_ref.shape[-1]:
        part_ref[...] = p
    else:                                                # widen partial row to 128 lanes
        part_ref[...] = jnp.zeros_like(part_ref)
        part_ref[:, :c] = p


def _choose_row_tile(B, D, C, cw, co, in_bytes, out_bytes, tile_b, vmem_budget):
    """Rows per grid step: as large as the VMEM budget allows (mem-bound
    roofline), with >= 2 parallel tiles when B allows so v7x megacore can
    split the grid, and bp == B whenever B divides cleanly (no padding copy)."""
    nt = pl.cdiv(B, tile_b)
    if nt == 1 and B >= 2 * _SUBLANES:
        nt = 2                               # keep both v7x TensorCores busy
    tb = _round_up(pl.cdiv(B, nt), _SUBLANES)

    weight_bytes = 2 * D * cw * in_bytes     # fused weights, double-buffered (default)
    part_bytes = 2 * _round_up(C, _LANES) * 4

    def step_bytes(t):
        rows = 2 * t * (D * in_bytes + C * 4 + 4 + co * out_bytes)
        return weight_bytes + rows + part_bytes

    while tb > _SUBLANES and step_bytes(tb) > vmem_budget:
        tb = _round_up(tb // 2, _SUBLANES)

    nt = pl.cdiv(B, tb)
    return tb, nt, nt * tb, step_bytes(tb)


def mcl_loss_forward(batch_data, w_main_label, w_main_uni, w_teacher, label, mask,
                     *, tile_b=1024, compute_dtype=jnp.bfloat16,
                     out_dtype=jnp.float32, vmem_budget=24 << 20):
    """Returns (constant_1, loss_1, prediction_dict) mirroring MCLLoss.forward."""
    B, D = batch_data.shape
    C = w_main_label.shape[1]
    cd = _round_up(C, _LANES)          # lane-aligned width of the in-register diff block
    co = _round_up(2 * C, _LANES)      # stored prediction slab width [label | unimodal]
    cw = cd + co                       # fused weight / dot width

    in_bytes = jnp.dtype(compute_dtype).itemsize
    out_bytes = jnp.dtype(out_dtype).itemsize
    tb, nt, bp, step_bytes = _choose_row_tile(
        B, D, C, cw, co, in_bytes, out_bytes, tile_b, vmem_budget)

    # Fused, lane-padded weights.  Diff block first (lane 0), predictions at the
    # 128-aligned offset cd so both the loss subtract and the output store are
    # lane-aligned.  p_label is never materialized (folded into the diff).
    # TODO(synk): for very large D*cw, tile D onto an "arbitrary" K grid axis with
    # a VMEM accumulator and single-buffer these grid-invariant weight specs
    # (pipeline_mode=pl.Buffered(1)) to halve their VMEM cost on v7x.
    w_fused = jnp.zeros((D, cw), compute_dtype)
    w_fused = w_fused.at[:, 0:C].set((w_main_label - w_teacher).astype(compute_dtype))
    w_fused = w_fused.at[:, cd:cd + C].set(w_main_label.astype(compute_dtype))
    w_fused = w_fused.at[:, cd + C:cd + 2 * C].set(w_main_uni.astype(compute_dtype))

    x_c = batch_data.astype(compute_dtype)
    label_f = label.astype(jnp.float32)                   # (B, C), natural width
    mask_col = mask.astype(jnp.float32)[:, None]          # (B, 1)

    pad_rows = bp - B
    if pad_rows:                       # only when B doesn't divide into row tiles
        x_c = jnp.pad(x_c, ((0, pad_rows), (0, 0)))
        label_f = jnp.pad(label_f, ((0, pad_rows), (0, 0)))
        mask_col = jnp.pad(mask_col, ((0, pad_rows), (0, 0)))   # padded rows -> mask 0

    vmem_limit = int(min(max(2 * step_bytes + (8 << 20), 16 << 20), 64 << 20))

    y_slab, partials = pl.pallas_call(
        _mcl_kernel,
        out_shape=(
            jax.ShapeDtypeStruct((bp, co), out_dtype),        # [label | unimodal | pad]
            jax.ShapeDtypeStruct((1, nt * cd), jnp.float32),  # per-tile lane partials
        ),
        grid=(nt,),
        in_specs=[
            pl.BlockSpec((tb, D), lambda i: (i, 0)),     # batch row tile (bf16)
            pl.BlockSpec((D, cw), lambda i: (0, 0)),     # fused weights (grid-invariant)
            pl.BlockSpec((tb, C), lambda i: (i, 0)),     # label at natural width
            pl.BlockSpec((tb, 1), lambda i: (i, 0)),     # row mask
        ],
        out_specs=(
            pl.BlockSpec((tb, co), lambda i: (i, 0)),
            pl.BlockSpec((1, cd), lambda i: (0, i)),
        ),
        compiler_params=pltpu.CompilerParams(
            dimension_semantics=("parallel",),
            vmem_limit_bytes=vmem_limit),
    )(x_c, w_fused, label_f, mask_col)

    pred_label = y_slab[:B, 0:C]
    unimodal = y_slab[:B, C:2 * C]     # .detach() is a no-op in the forward pass

    # Finalize the masked-MSE mean outside the hot loop (one lane reduce + divide).
    # TODO(synk): p_label[mask] boolean indexing has a dynamic shape; emulated as a
    # 0/1-weighted mean.  An all-False mask yields 0.0 here (PyTorch: NaN).
    n_elems = jnp.sum(mask.astype(jnp.float32)) * jnp.float32(C)
    loss_1 = jnp.sum(partials) / jnp.maximum(n_elems, jnp.float32(1.0))

    prediction = {"label": pred_label, "unimodal": unimodal}
    # The PyTorch forward returns the literal constant 1.
    return 1, loss_1, prediction


if __name__ == "__main__":
    B, D, C = 8, 32, 8   # small synthetic shapes: batch=8, hidden=32, classes=8

    key = jax.random.PRNGKey(0)
    k_x, k_wl, k_wu, k_wt, k_lab, k_mask = jax.random.split(key, 6)

    batch_data = jax.random.normal(k_x, (B, D), dtype=jnp.float32)
    # deterministic "checkpoint-free" parameter init for the synthetic nets
    w_main_label = jax.random.normal(k_wl, (D, C), dtype=jnp.float32) * 0.05
    w_main_uni = jax.random.normal(k_wu, (D, C), dtype=jnp.float32) * 0.05
    w_teacher = jax.random.normal(k_wt, (D, C), dtype=jnp.float32) * 0.05
    label = jax.random.normal(k_lab, (B, C), dtype=jnp.float32)
    mask = jax.random.bernoulli(k_mask, p=0.5, shape=(B,))

    const_one, loss_1, prediction = mcl_loss_forward(
        batch_data, w_main_label, w_main_uni, w_teacher, label, mask)
    jax.block_until_ready((loss_1, prediction))

    # Plain-JAX reference using the same bf16-operand / f32-accumulate recipe.
    xb = batch_data.astype(jnp.bfloat16)
    pred_ref = jnp.dot(xb, w_main_label.astype(jnp.bfloat16),
                       preferred_element_type=jnp.float32)
    uni_ref = jnp.dot(xb, w_main_uni.astype(jnp.bfloat16),
                      preferred_element_type=jnp.float32)
    p_lab_ref = jnp.dot(xb, w_teacher.astype(jnp.bfloat16),
                        preferred_element_type=jnp.float32)
    m = mask.astype(jnp.float32)[:, None]
    sq = (pred_ref - (p_lab_ref + label)) ** 2 * m
    denom = jnp.maximum(jnp.sum(m) * C, 1.0)
    loss_ref = jnp.sum(sq) / denom

    # bf16 operands + the folded (w_label - w_teacher) diff are not bit-identical
    # to the two-dot reference; tolerances sized accordingly.
    assert jnp.allclose(loss_1, loss_ref, rtol=5e-2, atol=1e-2), (loss_1, loss_ref)
    assert jnp.allclose(prediction["label"], pred_ref, rtol=2e-2, atol=2e-2)
    assert jnp.allclose(prediction["unimodal"], uni_ref, rtol=2e-2, atol=2e-2)
    assert int(const_one) == 1

    print("KERNEL_OK")
</pallas_src>

<mosaic_0001>
module attributes {stable_mosaic.version = 11 : i64} {
  func.func @_mcl_kernel(%arg0: i32, %arg1: memref<8x32xbf16, #tpu.memory_space<vmem>>, %arg2: memref<32x256xbf16, #tpu.memory_space<vmem>>, %arg3: memref<8x8xf32, #tpu.memory_space<vmem>>, %arg4: memref<8x1xf32, #tpu.memory_space<vmem>>, %arg5: memref<8x128xf32, #tpu.memory_space<vmem>>, %arg6: memref<1x128xf32, #tpu.memory_space<vmem>>) attributes {dimension_semantics = [#tpu.dimension_semantics<parallel>], iteration_bounds = array<i64: 1>, scalar_prefetch = 0 : i64, scratch_operands = 0 : i64, tpu.core_type = #tpu.core_type<tc>, window_params = [{transform_indices = @transform_0, window_bounds = array<i64: 8, 32>}, {pipeline_mode = #tpu.pipeline_mode<synchronous>, transform_indices = @transform_1, window_bounds = array<i64: 32, 256>}, {transform_indices = @transform_2, window_bounds = array<i64: 8, 8>}, {transform_indices = @transform_3, window_bounds = array<i64: 8, 1>}, {transform_indices = @transform_4, window_bounds = array<i64: 8, 128>}, {transform_indices = @transform_5, window_bounds = array<i64: 1, 128>}]} {
    %c0 = arith.constant 0 : index
    %c0_0 = arith.constant 0 : index
    %0 = vector.load %arg1[%c0, %c0_0] : memref<8x32xbf16, #tpu.memory_space<vmem>>, vector<8x32xbf16>
    %c0_1 = arith.constant 0 : index
    %c0_2 = arith.constant 0 : index
    %1 = vector.load %arg2[%c0_1, %c0_2] : memref<32x256xbf16, #tpu.memory_space<vmem>>, vector<32x256xbf16>
    %cst = arith.constant dense<0.000000e+00> : vector<8x256xf32>
    %2 = tpu.matmul %0, %1, %cst {dimension_numbers = #tpu.dot_dimension_numbers<[1], [0], [0], [1], [0, 0, 1, 1], [], []>} : vector<8x32xbf16>, vector<32x256xbf16>, vector<8x256xf32> -> vector<8x256xf32>
    %3 = vector.extract_strided_slice %2 {offsets = [0, 128], sizes = [8, 128], strides = [1, 1]} : vector<8x256xf32> to vector<8x128xf32>
    %c0_3 = arith.constant 0 : index
    %c0_4 = arith.constant 0 : index
    %4 = vector.load %arg5[%c0_3, %c0_4] : memref<8x128xf32, #tpu.memory_space<vmem>>, vector<8x128xf32>
    tpu.vector_store %arg5[%c0_3, %c0_4], %3 {strides = array<i32>} : memref<8x128xf32, #tpu.memory_space<vmem>>, vector<8x128xf32>,
    %5 = vector.extract_strided_slice %2 {offsets = [0, 0], sizes = [8, 8], strides = [1, 1]} : vector<8x256xf32> to vector<8x8xf32>
    %c0_5 = arith.constant 0 : index
    %c0_6 = arith.constant 0 : index
    %6 = vector.load %arg3[%c0_5, %c0_6] : memref<8x8xf32, #tpu.memory_space<vmem>>, vector<8x8xf32>
    %7 = arith.subf %5, %6 : vector<8x8xf32>
    %8 = arith.mulf %7, %7 : vector<8x8xf32>
    %c0_7 = arith.constant 0 : index
    %c0_8 = arith.constant 0 : index
    %9 = vector.load %arg4[%c0_7, %c0_8] : memref<8x1xf32, #tpu.memory_space<vmem>>, vector<8x1xf32>
    %10 = vector.broadcast %9 : vector<8x1xf32> to vector<8x8xf32>
    %11 = arith.mulf %8, %10 : vector<8x8xf32>
    %cst_9 = arith.constant dense<0.000000e+00> : vector<8xf32>
    %12 = vector.multi_reduction <add>, %11, %cst_9 [0] : vector<8x8xf32> to vector<8xf32>
    %13 = vector.shape_cast %12 : vector<8xf32> to vector<1x8xf32>
    %cst_10 = arith.constant 0.000000e+00 : f32
    %14 = vector.broadcast %cst_10 : f32 to vector<1x128xf32>
    %c0_11 = arith.constant 0 : index
    %c0_12 = arith.constant 0 : index
    %15 = vector.load %arg6[%c0_11, %c0_12] : memref<1x128xf32, #tpu.memory_space<vmem>>, vector<1x128xf32>
    tpu.vector_store %arg6[%c0_11, %c0_12], %14 {strides = array<i32>} : memref<1x128xf32, #tpu.memory_space<vmem>>, vector<1x128xf32>,
    %c0_13 = arith.constant 0 : index
    %c0_14 = arith.constant 0 : index
    %16 = vector.load %arg6[%c0_13, %c0_14] : memref<1x128xf32, #tpu.memory_space<vmem>>, vector<1x8xf32>
    tpu.vector_store %arg6[%c0_13, %c0_14], %13 {strides = array<i32>} : memref<1x128xf32, #tpu.memory_space<vmem>>, vector<1x8xf32>,
    return
  }
  func.func @transform_0(%arg0: i32) -> (i32, i32) {
    %c0_i32 = arith.constant 0 : i32
    %c0_i32_0 = arith.constant 0 : i32
    return %arg0, %c0_i32 : i32, i32
  }
  func.func @transform_1(%arg0: i32) -> (i32, i32) {
    %c0_i32 = arith.constant 0 : i32
    %c0_i32_0 = arith.constant 0 : i32
    %c0_i32_1 = arith.constant 0 : i32
    return %c0_i32, %c0_i32_0 : i32, i32
  }
  func.func @transform_2(%arg0: i32) -> (i32, i32) {
    %c0_i32 = arith.constant 0 : i32
    %c0_i32_0 = arith.constant 0 : i32
    return %arg0, %c0_i32 : i32, i32
  }
  func.func @transform_3(%arg0: i32) -> (i32, i32) {
    %c0_i32 = arith.constant 0 : i32
    %c0_i32_0 = arith.constant 0 : i32
    return %arg0, %c0_i32 : i32, i32
  }
  func.func @transform_4(%arg0: i32) -> (i32, i32) {
    %c0_i32 = arith.constant 0 : i32
    %c0_i32_0 = arith.constant 0 : i32
    return %arg0, %c0_i32 : i32, i32
  }
  func.func @transform_5(%arg0: i32) -> (i32, i32) {
    %c0_i32 = arith.constant 0 : i32
    %c0_i32_0 = arith.constant 0 : i32
    return %c0_i32, %arg0 : i32, i32
  }
}

</mosaic_0001>

<bundles_post_ra>
// kernel: tpu_custom_call.1
= control target key start
LH: loop header
LB: loop body
LE: loop exit
PB: predicated region body
PF: predicated region fallthrough
CT: control target
= control target key end

     0   :  { %11 = vsyncpa [#allocation3], 0  ;;  %s330_s0 = inlined_call_operand.vmem [shape: bf16[8,32], index: 0, kind: input, shape index: {}]   ;;  %s331_s1 = inlined_call_operand.hbm [shape: bf16[32,256], index: 1, kind: input, shape index: {}]   ;;  %s332_s2 = inlined_call_operand.vmem [shape: f32[8,8], index: 2, kind: input, shape index: {}]   ;;  %s333_s3 = inlined_call_operand.vmem [shape: f32[8,1], index: 3, kind: input, shape index: {}]   ;;  %s334_s4 = inlined_call_operand.hbm [shape: f32[8,128], index: 4, kind: output, shape index: {0}]   ;;  %s335_s5 = inlined_call_operand.hbm [shape: f32[1,128], index: 5, kind: output, shape index: {1}]  }
   0x1   :  { %12 = vsyncpa [#allocation4], 0 }
   0x2   :  { %13 = vsyncpa [#allocation7], 0  ;;  %s248_s18 = smov [#allocation2]   ;;  %s176_s22 = scalar_lea.hbm %s331_s1, 512 }
   0x3   :  { %s21_s19 = sshll.u32 %s248_s18, 4  ;;  %p177_p0 = scmp.ne.s32.totalorder %s331_s1, %s176_s22  ;;  %s22_s19 = int_to_ptr.vmem [resolvable:$true] %s21_s19 }
   0x4   :  { %p180_p1 = scmp.lt.u32.totalorder %s176_s22, %s331_s1 }
   0x6   :  { %p182_p2 = pnand %p180_p1, %p177_p0 }
   0x8   :  { %185 = shalt.err (!%p182_p2)
}
   0x9   :  { %s186_s27 = scalar_lea.vmem %s22_s19, 512  ;;  %p191_p4 = scmp.lt.s32.totalorder %s22_s19, %s22_s19 }
   0xa   :  { %p187_p3 = scmp.ne.s32.totalorder %s22_s19, %s186_s27  ;;  %p192_p5 = scmp.lt.s32.totalorder %s186_s27, %s186_s27 }
   0xc   :  { %p193_p6 = por %p192_p5, %p191_p4 }
   0xe   :  { %p194_p7 = pnand %p193_p6, %p187_p3 }
  0x10   :  { %197 = shalt.err (!%p194_p7)
}
  0x11   :  { %s249_s28 = smov 128   ;;  %s250_s29 = smov 8  }
  0x12   :  { %27 = dma.hbm_to_vmem [thread:$0]  %s331_s1, 512, %s22_s19, [#allocation3], %s249_s28, %s249_s28, %s250_s29  }
  0x13   :  { %242 = dma.done.wait [#allocation3], 512  }
  0x14   :  { %243 = vsyncadd [#allocation3], 4294966784  ;;  %v251_v0 = vmov 0   ;;  %v170_v1 = vld [vmem:[#allocation2 + $0x4] ss:$8 sps:$4 sm:$0xff]   ;;  %vm61_vm0 = vcmask 261120  }
  0x15   :  { %97 = vmatprep.mubr.bf16.mxu0 %v251_v0  ;;  %169 = vset.pattern.permute.xlu0 %v251_v0  ;;  %v172_v2 = vld [vmem:[#allocation2] ss:$8 sps:$4 sm:$0xff]   ;;  %v173_v3 = vld [vmem:[#allocation2 + $0x14] ss:$8 sps:$4 sm:$0xff]   ;;  %v175_v4 = vld [vmem:[#allocation2 + $0x10] ss:$8 sps:$4 sm:$0xff]  }
  0x16   :  { %65 = vmatprep.subr.bf16.mxu0 %v170_v1  ;;  %v110_v5 = vld [vmem:[%s333_s3] sm:$0xff]  ;;  %v252_v7 = vmov 0.0   ;;  %s253_s10 = smov [#allocation5]  }
  0x17   :  { %66 = vmatpush1.bf16.msra.mxu0 %v172_v2  ;;  %113 = vperm.xlu0 %169, %v110_v5   ;;  %v36_v6 = vld [vmem:[%s330_s0] sm:$0xf]  ;;  %125 = vst [vmem:[#allocation6] sm:$0x1] %v252_v7  ;;  %s134_s11 = sshll.u32 %s253_s10, 4  ;;  %s135_s11 = int_to_ptr.vmem [resolvable:$true] %s134_s11 }
  0x18   :  { %67 = vmatprep.subr.bf16.mxu0 %v173_v3  ;;  %v107_v8 = vld [vmem:[%s332_s2] sm:$0xff]  ;;  %s198_s0 = scalar_lea.vmem %s135_s11, 128  ;;  %p203_p9 = scmp.lt.s32.totalorder %s135_s11, %s135_s11 }
  0x19   :  { %p199_p8 = scmp.ne.s32.totalorder %s135_s11, %s198_s0  ;;  %p204_p10 = scmp.lt.s32.totalorder %s198_s0, %s198_s0 }
  0x1b   :  { %68 = vmatpush1.bf16.msra.mxu0 %v175_v4  ;;  %p205_p11 = por %p204_p10, %p203_p9 }
  0x1d   :  { %p206_p12 = pnand %p205_p11, %p199_p8 }
  0x1e   :  { %161 = vmatmul.mubr.msk.bf16.vlgmr.msra.gmra.mrb[0].mxu0 %vm61_vm0, %v36_v6 }
  0x96   :  { %v114_v13 = vpop.permute.xlu0 %113 }
  0xf1   :  { %v99_v9 = vpop.f32.mrb[0].mxu0 }
  0xf2   :  { %v108_v10 = vsub.f32 %v99_v9, %v107_v8  ;;  %v101_v11 = vpop.f32.mrb[1].mxu0 }
  0xf3   :  { %106 = vst [vmem:[#allocation5] sm:$0xff] %v101_v11  ;;  %v103_v12 = vpop.f32.mrb[2].mxu0 }
  0xf4   :  { %v109_v14 = vmul.f32 %v108_v10, %v108_v10  ;;  %v104_v15 = vpop.f32.mrb[3].mxu0 }
  0xf5   :  { %209 = shalt.err (!%p206_p12)
}
  0xf6   :  { %s210_s2 = scalar_lea.hbm %s334_s4, 128 }
  0xf7   :  { %p211_p13 = scmp.ne.s32.totalorder %s334_s4, %s210_s2  ;;  %p214_p0 = scmp.lt.u32.totalorder %s210_s2, %s334_s4 }
  0xf9   :  { %p216_p1 = pnand %p214_p0, %p211_p13 }
  0xfb   :  { %219 = shalt.err (!%p216_p1)
}
  0xfc   :  { %137 = dma.vmem_to_hbm [thread:$0]  %s135_s11, 128, %s334_s4, [#allocation4]   ;;  %vm117_vm1 = vcmask 64512   ;;  %v116_v16 = vmul.f32 %v114_v13, %v109_v14  ;;  %vm126_vm2 = vcmask 57344  }
  0xfd   :  { %s254_s21 = smov [#allocation6]  }
  0xfe   :  { %v118_v17 = vsel %vm117_vm1, %v116_v16, 0.0  ;;  %s144_s22 = sshll.u32 %s254_s21, 4  ;;  %s145_s22 = int_to_ptr.vmem [resolvable:$true] %s144_s22 }
  0xff   :  { %v119_v18 = vrot.slane %v118_v17, 4  ;;  %s220_s23 = scalar_lea.vmem %s145_s22, 16  ;;  %s224_s24 = scalar_lea.vmem %s145_s22, 32 }
 0x100   :  { %p221_p2 = scmp.ne.s32.totalorder %s145_s22, %s220_s23  ;;  %p225_p3 = scmp.lt.s32.totalorder %s145_s22, %s145_s22 }
 0x101   :  { %v120_v19 = vadd.f32 %v119_v18, %v118_v17  ;;  %p226_p4 = scmp.lt.s32.totalorder %s224_s24, %s220_s23 }
 0x103   :  { %v121_v20 = vrot.slane %v120_v19, 2  ;;  %p227_p5 = por %p226_p4, %p225_p3 }
 0x105   :  { %v122_v21 = vadd.f32 %v121_v20, %v120_v19  ;;  %p228_p6 = pnand %p227_p5, %p221_p2 }
 0x107   :  { %v123_v22 = vrot.slane %v122_v21, 1 }
 0x109   :  { %v124_v23 = vadd.f32 %v123_v22, %v122_v21 }
 0x10b   :  { %127 = vst.msk [vmem:[#allocation6] sm:$0x1] %vm126_vm2, %v124_v23 }
 0x10c   :  { %231 = shalt.err (!%p228_p6)
}
 0x10d   :  { %s232_s26 = scalar_lea.hbm %s335_s5, 16 }
 0x10e   :  { %p233_p7 = scmp.ne.s32.totalorder %s335_s5, %s232_s26  ;;  %p236_p8 = scmp.lt.u32.totalorder %s232_s26, %s335_s5 }
 0x110   :  { %p238_p9 = pnand %p236_p8, %p233_p7 }
 0x112   :  { %241 = shalt.err (!%p238_p9)
}
 0x113   :  { %147 = dma.vmem_to_hbm [thread:$0]  %s145_s22, 16, %s335_s5, [#allocation7]  }
 0x114   :  { %244 = dma.done.wait [#allocation4], 128  }
 0x115   :  { %245 = vsyncadd [#allocation4], 4294967168 }
 0x116   :  { %246 = dma.done.wait [#allocation7], 16  }
 0x117   :  { %247 = vsyncadd [#allocation7], 4294967280 }
 0x118   :  { %154 = vsyncpa [#allocation3], 1 }
 0x119   :  { %155 = vsyncpa [#allocation4], 1 }
 0x11a   :  { %156 = vsyncpa [#allocation7], 1 }

</bundles_post_ra>
